<compile_context>
chip_gen: v7x
topology: tpu7x:2x2x1
jax: 0.10.0
libtpu: 0.0.40
codegen_flags: <defaults>
</compile_context>

<pallas_src>
import jax
import jax.numpy as jnp
from jax.experimental import pallas as pl
from jax.experimental.pallas import tpu as pltpu


def _make_kernel(B, C, bt, H, W):
    rows = bt * H

    def kernel(vis_ref, ir_ref, fus_ref, out_ref):
        # ---- shared edge masks (computed once, reused by all three images) ----
        # Row-within-image index via a 3-D iota (no integer modulo).
        r_in_img = jax.lax.broadcasted_iota(jnp.int32, (bt, H, W), 1).reshape(rows, W)
        col_idx = jax.lax.broadcasted_iota(jnp.int32, (rows, W), 1)
        is_top = r_in_img == 0
        is_bot = r_in_img == (H - 1)
        is_left = col_idx == 0
        is_right = col_idx == (W - 1)

        # Replicate-edge neighbour fetches: XLU rolls + masks.
        def up(x):     # x[max(i-1, top-of-image), j]
            return jnp.where(is_top, x, pltpu.roll(x, shift=1, axis=0))

        def down(x):   # x[min(i+1, bottom-of-image), j]
            return jnp.where(is_bot, x, pltpu.roll(x, shift=rows - 1, axis=0))

        def left(x):   # x[i, max(j-1, 0)]
            return jnp.where(is_left, x, pltpu.roll(x, shift=1, axis=1))

        def right(x):  # x[i, min(j+1, W-1)]
            return jnp.where(is_right, x, pltpu.roll(x, shift=W - 1, axis=1))

        def gray(ref):
            x = ref[...].astype(jnp.float32)          # (bt, C, H, W)
            if C == 1:
                g = x[:, 0]
            else:
                g = 0.299 * x[:, 0] + 0.587 * x[:, 1] + 0.114 * x[:, 2]
            return g.reshape(rows, W)                 # free relayout when H % 8 == 0

        def abs_grad(g):
            # Separable Sobel with replicate ("edge") boundary handling.
            u = up(g)
            d = down(g)
            v_sum = u + 2.0 * g + d                   # vertical [1, 2, 1]
            v_dif = d - u                             # vertical [-1, 0, 1]
            gx = right(v_sum) - left(v_sum)
            gy = left(v_dif) + 2.0 * v_dif + right(v_dif)
            return jnp.abs(gx) + jnp.abs(gy)

        d1 = abs_grad(gray(vis_ref))
        d2 = abs_grad(gray(ir_ref))
        df = abs_grad(gray(fus_ref))

        diff = jnp.abs(jnp.maximum(d1, d2) - df)

        if B % bt != 0:
            # cdiv grid: mask rows belonging to batch indices >= B (stale data in
            # the tail block).  Rolls never leak across image boundaries (is_top /
            # is_bot replicate at every boundary), so masking the sum suffices.
            local_b = jax.lax.broadcasted_iota(jnp.int32, (bt, H, W), 0).reshape(rows, W)
            valid = (pl.program_id(0) * bt + local_b) < B
            diff = jnp.where(valid, diff, 0.0)

        # Per-lane partial sums only; cross-lane reduce + mean happen outside.
        out_ref[...] = jnp.sum(diff, axis=0, keepdims=True).reshape(1, 1, W)

    return kernel


def _vmem_capacity_bytes():
    try:
        return int(pltpu.get_tpu_info().vmem_capacity_bytes)
    except Exception:
        return 64 << 20     # conservative fallback (v7x per-TensorCore VMEM)


def _per_sample_vmem_bytes(C, H, W, in_bytes):
    # 3 images x C channels x 2 pipeline buffers at the input dtype,
    # plus ~16 live f32 temporaries (gray planes, Sobel intermediates, masks).
    return 3 * C * 2 * H * W * in_bytes + 16 * H * W * 4


def l_grad(image_visible, image_infrared, image_fused, *, batch_tile=None):
    """Pallas implementation of L_Grad.forward.  Inputs: (B, C, H, W), C in {1, 3}."""
    B, C, H, W = image_visible.shape
    assert C in (1, 3), "this kernel implements the RGB (c==3) and gray (c==1) paths"
    assert image_infrared.shape == (B, C, H, W)
    assert image_fused.shape == (B, C, H, W)

    in_bytes = jnp.dtype(image_visible.dtype).itemsize
    cap = _vmem_capacity_bytes()
    per_sample = _per_sample_vmem_bytes(C, H, W, in_bytes)

    if batch_tile is None:
        budget = min(int(cap * 0.5), 40 << 20)
        bt = max(1, budget // per_sample)
        # Keep >= 2 grid steps when B >= 2 so both v7x TensorCores get work
        # ("parallel" sharding is a no-op on single-TC v5e/v6e).
        bt = int(min(bt, max(1, pl.cdiv(B, 2))))
    else:
        bt = int(batch_tile)
    nblk = int(pl.cdiv(B, bt))

    vmem_limit = int(min(max(bt * per_sample + (4 << 20), 16 << 20),
                         min(int(cap * 0.6), 48 << 20)))

    in_spec = pl.BlockSpec((bt, C, H, W), lambda i: (i, 0, 0, 0))
    out_spec = pl.BlockSpec((1, 1, W), lambda i: (i, 0, 0))

    partial = pl.pallas_call(
        _make_kernel(B, C, bt, H, W),
        out_shape=jax.ShapeDtypeStruct((nblk, 1, W), jnp.float32),
        grid_spec=pltpu.PrefetchScalarGridSpec(
            num_scalar_prefetch=0,
            grid=(nblk,),
            in_specs=[in_spec, in_spec, in_spec],
            out_specs=out_spec,
        ),
        compiler_params=pltpu.CompilerParams(
            dimension_semantics=("parallel",),
            vmem_limit_bytes=vmem_limit,
        ),
    )(image_visible, image_infrared, image_fused)

    return jnp.sum(partial) / jnp.float32(B * H * W)


def _l_grad_reference(vis, ir, fus):
    # Pure-JAX reference for verification (matches the PyTorch module).
    def gray(x):
        if x.shape[1] == 1:
            return x[:, 0]
        return 0.299 * x[:, 0] + 0.587 * x[:, 1] + 0.114 * x[:, 2]  # (B, H, W)

    def grad(g):
        p = jnp.pad(g, ((0, 0), (1, 1), (1, 1)), mode="edge")
        H, W = g.shape[1], g.shape[2]
        tl = p[:, 0:H, 0:W]; tc = p[:, 0:H, 1:W + 1]; tr = p[:, 0:H, 2:W + 2]
        ml = p[:, 1:H + 1, 0:W]; mr = p[:, 1:H + 1, 2:W + 2]
        bl = p[:, 2:H + 2, 0:W]; bc = p[:, 2:H + 2, 1:W + 1]; br = p[:, 2:H + 2, 2:W + 2]
        gx = -tl + tr - 2.0 * ml + 2.0 * mr - bl + br
        gy = -tl - 2.0 * tc - tr + bl + 2.0 * bc + br
        return jnp.abs(gx) + jnp.abs(gy)

    d1 = grad(gray(vis)); d2 = grad(gray(ir)); df = grad(gray(fus))
    return jnp.mean(jnp.abs(jnp.maximum(d1, d2) - df))


if __name__ == "__main__":
    key = jax.random.PRNGKey(0)
    k1, k2, k3 = jax.random.split(key, 3)
    B, C, H, W = 2, 3, 16, 16
    vis = jax.random.uniform(k1, (B, C, H, W), dtype=jnp.float32)
    ir = jax.random.uniform(k2, (B, C, H, W), dtype=jnp.float32)
    fus = jax.random.uniform(k3, (B, C, H, W), dtype=jnp.float32)

    out = jax.block_until_ready(l_grad(vis, ir, fus))

    ref = _l_grad_reference(vis, ir, fus)
    assert jnp.allclose(out, ref, atol=1e-5, rtol=1e-4), (out, ref)

    print("KERNEL_OK")
</pallas_src>

<mosaic_0001>
module attributes {stable_mosaic.version = 11 : i64} {
  func.func @kernel(%arg0: i32, %arg1: memref<1x3x16x16xf32, #tpu.memory_space<vmem>>, %arg2: memref<1x3x16x16xf32, #tpu.memory_space<vmem>>, %arg3: memref<1x3x16x16xf32, #tpu.memory_space<vmem>>, %arg4: memref<1x1x16xf32, #tpu.memory_space<vmem>>) attributes {dimension_semantics = [#tpu.dimension_semantics<parallel>], iteration_bounds = array<i64: 2>, scalar_prefetch = 0 : i64, scratch_operands = 0 : i64, tpu.core_type = #tpu.core_type<tc>, window_params = [{transform_indices = @transform_0, window_bounds = array<i64: 1, 3, 16, 16>}, {transform_indices = @transform_1, window_bounds = array<i64: 1, 3, 16, 16>}, {transform_indices = @transform_2, window_bounds = array<i64: 1, 3, 16, 16>}, {transform_indices = @transform_3, window_bounds = array<i64: 1, 1, 16>}]} {
    %0 = tpu.iota {dimensions = array<i32: 1>} : vector<1x16x16xi32>
    %1 = vector.shape_cast %0 : vector<1x16x16xi32> to vector<16x16xi32>
    %2 = tpu.iota {dimensions = array<i32: 1>} : vector<16x16xi32>
    %c0_i32 = arith.constant 0 : i32
    %3 = vector.broadcast %c0_i32 : i32 to vector<16x16xi32>
    %4 = arith.cmpi eq, %1, %3 : vector<16x16xi32>
    %c15_i32 = arith.constant 15 : i32
    %5 = vector.broadcast %c15_i32 : i32 to vector<16x16xi32>
    %6 = arith.cmpi eq, %1, %5 : vector<16x16xi32>
    %c0_i32_0 = arith.constant 0 : i32
    %7 = vector.broadcast %c0_i32_0 : i32 to vector<16x16xi32>
    %8 = arith.cmpi eq, %2, %7 : vector<16x16xi32>
    %c15_i32_1 = arith.constant 15 : i32
    %9 = vector.broadcast %c15_i32_1 : i32 to vector<16x16xi32>
    %10 = arith.cmpi eq, %2, %9 : vector<16x16xi32>
    %c0 = arith.constant 0 : index
    %c0_2 = arith.constant 0 : index
    %c0_3 = arith.constant 0 : index
    %c0_4 = arith.constant 0 : index
    %11 = vector.load %arg1[%c0, %c0_2, %c0_3, %c0_4] : memref<1x3x16x16xf32, #tpu.memory_space<vmem>>, vector<1x3x16x16xf32>
    %12 = vector.extract_strided_slice %11 {offsets = [0, 0, 0, 0], sizes = [1, 1, 16, 16], strides = [1, 1, 1, 1]} : vector<1x3x16x16xf32> to vector<1x1x16x16xf32>
    %13 = vector.shape_cast %12 : vector<1x1x16x16xf32> to vector<1x16x16xf32>
    %cst = arith.constant 2.990000e-01 : f32
    %14 = vector.broadcast %cst : f32 to vector<1x16x16xf32>
    %15 = arith.mulf %14, %13 : vector<1x16x16xf32>
    %16 = vector.extract_strided_slice %11 {offsets = [0, 1, 0, 0], sizes = [1, 1, 16, 16], strides = [1, 1, 1, 1]} : vector<1x3x16x16xf32> to vector<1x1x16x16xf32>
    %17 = vector.shape_cast %16 : vector<1x1x16x16xf32> to vector<1x16x16xf32>
    %cst_5 = arith.constant 5.870000e-01 : f32
    %18 = vector.broadcast %cst_5 : f32 to vector<1x16x16xf32>
    %19 = arith.mulf %18, %17 : vector<1x16x16xf32>
    %20 = arith.addf %15, %19 : vector<1x16x16xf32>
    %21 = vector.extract_strided_slice %11 {offsets = [0, 2, 0, 0], sizes = [1, 1, 16, 16], strides = [1, 1, 1, 1]} : vector<1x3x16x16xf32> to vector<1x1x16x16xf32>
    %22 = vector.shape_cast %21 : vector<1x1x16x16xf32> to vector<1x16x16xf32>
    %cst_6 = arith.constant 1.140000e-01 : f32
    %23 = vector.broadcast %cst_6 : f32 to vector<1x16x16xf32>
    %24 = arith.mulf %23, %22 : vector<1x16x16xf32>
    %25 = arith.addf %20, %24 : vector<1x16x16xf32>
    %26 = vector.shape_cast %25 : vector<1x16x16xf32> to vector<16x16xf32>
    %c1_i32 = arith.constant 1 : i32
    %27 = tpu.dynamic_rotate %26 by %c1_i32 dim 0 : vector<16x16xf32>, i32 -> vector<16x16xf32>
    %28 = arith.select %4, %26, %27 : vector<16x16xi1>, vector<16x16xf32>
    %c15_i32_7 = arith.constant 15 : i32
    %29 = tpu.dynamic_rotate %26 by %c15_i32_7 dim 0 : vector<16x16xf32>, i32 -> vector<16x16xf32>
    %30 = arith.select %6, %26, %29 : vector<16x16xi1>, vector<16x16xf32>
    %cst_8 = arith.constant 2.000000e+00 : f32
    %31 = vector.broadcast %cst_8 : f32 to vector<16x16xf32>
    %32 = arith.mulf %31, %26 : vector<16x16xf32>
    %33 = arith.addf %28, %32 : vector<16x16xf32>
    %34 = arith.addf %33, %30 : vector<16x16xf32>
    %35 = arith.subf %30, %28 : vector<16x16xf32>
    %c15_i32_9 = arith.constant 15 : i32
    %36 = tpu.dynamic_rotate %34 by %c15_i32_9 dim 1 : vector<16x16xf32>, i32 -> vector<16x16xf32>
    %37 = arith.select %10, %34, %36 : vector<16x16xi1>, vector<16x16xf32>
    %c1_i32_10 = arith.constant 1 : i32
    %38 = tpu.dynamic_rotate %34 by %c1_i32_10 dim 1 : vector<16x16xf32>, i32 -> vector<16x16xf32>
    %39 = arith.select %8, %34, %38 : vector<16x16xi1>, vector<16x16xf32>
    %40 = arith.subf %37, %39 : vector<16x16xf32>
    %c1_i32_11 = arith.constant 1 : i32
    %41 = tpu.dynamic_rotate %35 by %c1_i32_11 dim 1 : vector<16x16xf32>, i32 -> vector<16x16xf32>
    %42 = arith.select %8, %35, %41 : vector<16x16xi1>, vector<16x16xf32>
    %cst_12 = arith.constant 2.000000e+00 : f32
    %43 = vector.broadcast %cst_12 : f32 to vector<16x16xf32>
    %44 = arith.mulf %43, %35 : vector<16x16xf32>
    %45 = arith.addf %42, %44 : vector<16x16xf32>
    %c15_i32_13 = arith.constant 15 : i32
    %46 = tpu.dynamic_rotate %35 by %c15_i32_13 dim 1 : vector<16x16xf32>, i32 -> vector<16x16xf32>
    %47 = arith.select %10, %35, %46 : vector<16x16xi1>, vector<16x16xf32>
    %48 = arith.addf %45, %47 : vector<16x16xf32>
    %49 = math.absf %40 : vector<16x16xf32>
    %50 = math.absf %48 : vector<16x16xf32>
    %51 = arith.addf %49, %50 : vector<16x16xf32>
    %c0_14 = arith.constant 0 : index
    %c0_15 = arith.constant 0 : index
    %c0_16 = arith.constant 0 : index
    %c0_17 = arith.constant 0 : index
    %52 = vector.load %arg2[%c0_14, %c0_15, %c0_16, %c0_17] : memref<1x3x16x16xf32, #tpu.memory_space<vmem>>, vector<1x3x16x16xf32>
    %53 = vector.extract_strided_slice %52 {offsets = [0, 0, 0, 0], sizes = [1, 1, 16, 16], strides = [1, 1, 1, 1]} : vector<1x3x16x16xf32> to vector<1x1x16x16xf32>
    %54 = vector.shape_cast %53 : vector<1x1x16x16xf32> to vector<1x16x16xf32>
    %cst_18 = arith.constant 2.990000e-01 : f32
    %55 = vector.broadcast %cst_18 : f32 to vector<1x16x16xf32>
    %56 = arith.mulf %55, %54 : vector<1x16x16xf32>
    %57 = vector.extract_strided_slice %52 {offsets = [0, 1, 0, 0], sizes = [1, 1, 16, 16], strides = [1, 1, 1, 1]} : vector<1x3x16x16xf32> to vector<1x1x16x16xf32>
    %58 = vector.shape_cast %57 : vector<1x1x16x16xf32> to vector<1x16x16xf32>
    %cst_19 = arith.constant 5.870000e-01 : f32
    %59 = vector.broadcast %cst_19 : f32 to vector<1x16x16xf32>
    %60 = arith.mulf %59, %58 : vector<1x16x16xf32>
    %61 = arith.addf %56, %60 : vector<1x16x16xf32>
    %62 = vector.extract_strided_slice %52 {offsets = [0, 2, 0, 0], sizes = [1, 1, 16, 16], strides = [1, 1, 1, 1]} : vector<1x3x16x16xf32> to vector<1x1x16x16xf32>
    %63 = vector.shape_cast %62 : vector<1x1x16x16xf32> to vector<1x16x16xf32>
    %cst_20 = arith.constant 1.140000e-01 : f32
    %64 = vector.broadcast %cst_20 : f32 to vector<1x16x16xf32>
    %65 = arith.mulf %64, %63 : vector<1x16x16xf32>
    %66 = arith.addf %61, %65 : vector<1x16x16xf32>
    %67 = vector.shape_cast %66 : vector<1x16x16xf32> to vector<16x16xf32>
    %c1_i32_21 = arith.constant 1 : i32
    %68 = tpu.dynamic_rotate %67 by %c1_i32_21 dim 0 : vector<16x16xf32>, i32 -> vector<16x16xf32>
    %69 = arith.select %4, %67, %68 : vector<16x16xi1>, vector<16x16xf32>
    %c15_i32_22 = arith.constant 15 : i32
    %70 = tpu.dynamic_rotate %67 by %c15_i32_22 dim 0 : vector<16x16xf32>, i32 -> vector<16x16xf32>
    %71 = arith.select %6, %67, %70 : vector<16x16xi1>, vector<16x16xf32>
    %cst_23 = arith.constant 2.000000e+00 : f32
    %72 = vector.broadcast %cst_23 : f32 to vector<16x16xf32>
    %73 = arith.mulf %72, %67 : vector<16x16xf32>
    %74 = arith.addf %69, %73 : vector<16x16xf32>
    %75 = arith.addf %74, %71 : vector<16x16xf32>
    %76 = arith.subf %71, %69 : vector<16x16xf32>
    %c15_i32_24 = arith.constant 15 : i32
    %77 = tpu.dynamic_rotate %75 by %c15_i32_24 dim 1 : vector<16x16xf32>, i32 -> vector<16x16xf32>
    %78 = arith.select %10, %75, %77 : vector<16x16xi1>, vector<16x16xf32>
    %c1_i32_25 = arith.constant 1 : i32
    %79 = tpu.dynamic_rotate %75 by %c1_i32_25 dim 1 : vector<16x16xf32>, i32 -> vector<16x16xf32>
    %80 = arith.select %8, %75, %79 : vector<16x16xi1>, vector<16x16xf32>
    %81 = arith.subf %78, %80 : vector<16x16xf32>
    %c1_i32_26 = arith.constant 1 : i32
    %82 = tpu.dynamic_rotate %76 by %c1_i32_26 dim 1 : vector<16x16xf32>, i32 -> vector<16x16xf32>
    %83 = arith.select %8, %76, %82 : vector<16x16xi1>, vector<16x16xf32>
    %cst_27 = arith.constant 2.000000e+00 : f32
    %84 = vector.broadcast %cst_27 : f32 to vector<16x16xf32>
    %85 = arith.mulf %84, %76 : vector<16x16xf32>
    %86 = arith.addf %83, %85 : vector<16x16xf32>
    %c15_i32_28 = arith.constant 15 : i32
    %87 = tpu.dynamic_rotate %76 by %c15_i32_28 dim 1 : vector<16x16xf32>, i32 -> vector<16x16xf32>
    %88 = arith.select %10, %76, %87 : vector<16x16xi1>, vector<16x16xf32>
    %89 = arith.addf %86, %88 : vector<16x16xf32>
    %90 = math.absf %81 : vector<16x16xf32>
    %91 = math.absf %89 : vector<16x16xf32>
    %92 = arith.addf %90, %91 : vector<16x16xf32>
    %c0_29 = arith.constant 0 : index
    %c0_30 = arith.constant 0 : index
    %c0_31 = arith.constant 0 : index
    %c0_32 = arith.constant 0 : index
    %93 = vector.load %arg3[%c0_29, %c0_30, %c0_31, %c0_32] : memref<1x3x16x16xf32, #tpu.memory_space<vmem>>, vector<1x3x16x16xf32>
    %94 = vector.extract_strided_slice %93 {offsets = [0, 0, 0, 0], sizes = [1, 1, 16, 16], strides = [1, 1, 1, 1]} : vector<1x3x16x16xf32> to vector<1x1x16x16xf32>
    %95 = vector.shape_cast %94 : vector<1x1x16x16xf32> to vector<1x16x16xf32>
    %cst_33 = arith.constant 2.990000e-01 : f32
    %96 = vector.broadcast %cst_33 : f32 to vector<1x16x16xf32>
    %97 = arith.mulf %96, %95 : vector<1x16x16xf32>
    %98 = vector.extract_strided_slice %93 {offsets = [0, 1, 0, 0], sizes = [1, 1, 16, 16], strides = [1, 1, 1, 1]} : vector<1x3x16x16xf32> to vector<1x1x16x16xf32>
    %99 = vector.shape_cast %98 : vector<1x1x16x16xf32> to vector<1x16x16xf32>
    %cst_34 = arith.constant 5.870000e-01 : f32
    %100 = vector.broadcast %cst_34 : f32 to vector<1x16x16xf32>
    %101 = arith.mulf %100, %99 : vector<1x16x16xf32>
    %102 = arith.addf %97, %101 : vector<1x16x16xf32>
    %103 = vector.extract_strided_slice %93 {offsets = [0, 2, 0, 0], sizes = [1, 1, 16, 16], strides = [1, 1, 1, 1]} : vector<1x3x16x16xf32> to vector<1x1x16x16xf32>
    %104 = vector.shape_cast %103 : vector<1x1x16x16xf32> to vector<1x16x16xf32>
    %cst_35 = arith.constant 1.140000e-01 : f32
    %105 = vector.broadcast %cst_35 : f32 to vector<1x16x16xf32>
    %106 = arith.mulf %105, %104 : vector<1x16x16xf32>
    %107 = arith.addf %102, %106 : vector<1x16x16xf32>
    %108 = vector.shape_cast %107 : vector<1x16x16xf32> to vector<16x16xf32>
    %c1_i32_36 = arith.constant 1 : i32
    %109 = tpu.dynamic_rotate %108 by %c1_i32_36 dim 0 : vector<16x16xf32>, i32 -> vector<16x16xf32>
    %110 = arith.select %4, %108, %109 : vector<16x16xi1>, vector<16x16xf32>
    %c15_i32_37 = arith.constant 15 : i32
    %111 = tpu.dynamic_rotate %108 by %c15_i32_37 dim 0 : vector<16x16xf32>, i32 -> vector<16x16xf32>
    %112 = arith.select %6, %108, %111 : vector<16x16xi1>, vector<16x16xf32>
    %cst_38 = arith.constant 2.000000e+00 : f32
    %113 = vector.broadcast %cst_38 : f32 to vector<16x16xf32>
    %114 = arith.mulf %113, %108 : vector<16x16xf32>
    %115 = arith.addf %110, %114 : vector<16x16xf32>
    %116 = arith.addf %115, %112 : vector<16x16xf32>
    %117 = arith.subf %112, %110 : vector<16x16xf32>
    %c15_i32_39 = arith.constant 15 : i32
    %118 = tpu.dynamic_rotate %116 by %c15_i32_39 dim 1 : vector<16x16xf32>, i32 -> vector<16x16xf32>
    %119 = arith.select %10, %116, %118 : vector<16x16xi1>, vector<16x16xf32>
    %c1_i32_40 = arith.constant 1 : i32
    %120 = tpu.dynamic_rotate %116 by %c1_i32_40 dim 1 : vector<16x16xf32>, i32 -> vector<16x16xf32>
    %121 = arith.select %8, %116, %120 : vector<16x16xi1>, vector<16x16xf32>
    %122 = arith.subf %119, %121 : vector<16x16xf32>
    %c1_i32_41 = arith.constant 1 : i32
    %123 = tpu.dynamic_rotate %117 by %c1_i32_41 dim 1 : vector<16x16xf32>, i32 -> vector<16x16xf32>
    %124 = arith.select %8, %117, %123 : vector<16x16xi1>, vector<16x16xf32>
    %cst_42 = arith.constant 2.000000e+00 : f32
    %125 = vector.broadcast %cst_42 : f32 to vector<16x16xf32>
    %126 = arith.mulf %125, %117 : vector<16x16xf32>
    %127 = arith.addf %124, %126 : vector<16x16xf32>
    %c15_i32_43 = arith.constant 15 : i32
    %128 = tpu.dynamic_rotate %117 by %c15_i32_43 dim 1 : vector<16x16xf32>, i32 -> vector<16x16xf32>
    %129 = arith.select %10, %117, %128 : vector<16x16xi1>, vector<16x16xf32>
    %130 = arith.addf %127, %129 : vector<16x16xf32>
    %131 = math.absf %122 : vector<16x16xf32>
    %132 = math.absf %130 : vector<16x16xf32>
    %133 = arith.addf %131, %132 : vector<16x16xf32>
    %134 = arith.maximumf %51, %92 : vector<16x16xf32>
    %135 = arith.subf %134, %133 : vector<16x16xf32>
    %136 = math.absf %135 : vector<16x16xf32>
    %cst_44 = arith.constant dense<0.000000e+00> : vector<16xf32>
    %137 = vector.multi_reduction <add>, %136, %cst_44 [0] : vector<16x16xf32> to vector<16xf32>
    %138 = vector.shape_cast %137 : vector<16xf32> to vector<1x16xf32>
    %139 = vector.shape_cast %138 : vector<1x16xf32> to vector<1x1x16xf32>
    %c0_45 = arith.constant 0 : index
    %c0_46 = arith.constant 0 : index
    %c0_47 = arith.constant 0 : index
    %140 = vector.load %arg4[%c0_45, %c0_46, %c0_47] : memref<1x1x16xf32, #tpu.memory_space<vmem>>, vector<1x1x16xf32>
    tpu.vector_store %arg4[%c0_45, %c0_46, %c0_47], %139 {strides = array<i32>} : memref<1x1x16xf32, #tpu.memory_space<vmem>>, vector<1x1x16xf32>,
    return
  }
  func.func @transform_0(%arg0: i32) -> (i32, i32, i32, i32) {
    %c0_i32 = arith.constant 0 : i32
    %c0_i32_0 = arith.constant 0 : i32
    %c0_i32_1 = arith.constant 0 : i32
    %c0_i32_2 = arith.constant 0 : i32
    return %arg0, %c0_i32, %c0_i32_0, %c0_i32_1 : i32, i32, i32, i32
  }
  func.func @transform_1(%arg0: i32) -> (i32, i32, i32, i32) {
    %c0_i32 = arith.constant 0 : i32
    %c0_i32_0 = arith.constant 0 : i32
    %c0_i32_1 = arith.constant 0 : i32
    %c0_i32_2 = arith.constant 0 : i32
    return %arg0, %c0_i32, %c0_i32_0, %c0_i32_1 : i32, i32, i32, i32
  }
  func.func @transform_2(%arg0: i32) -> (i32, i32, i32, i32) {
    %c0_i32 = arith.constant 0 : i32
    %c0_i32_0 = arith.constant 0 : i32
    %c0_i32_1 = arith.constant 0 : i32
    %c0_i32_2 = arith.constant 0 : i32
    return %arg0, %c0_i32, %c0_i32_0, %c0_i32_1 : i32, i32, i32, i32
  }
  func.func @transform_3(%arg0: i32) -> (i32, i32, i32) {
    %c0_i32 = arith.constant 0 : i32
    %c0_i32_0 = arith.constant 0 : i32
    %c0_i32_1 = arith.constant 0 : i32
    return %arg0, %c0_i32, %c0_i32_0 : i32, i32, i32
  }
}

</mosaic_0001>

<bundles_post_ra>
// kernel: tpu_custom_call.1
= control target key start
LH: loop header
LB: loop body
LE: loop exit
PB: predicated region body
PF: predicated region fallthrough
CT: control target
= control target key end

     0   :  { %s1538_s0 = inlined_call_operand.hbm [shape: f32[2,3,16,16], index: 0, kind: input, shape index: {}]   ;;  %s1539_s1 = inlined_call_operand.hbm [shape: f32[2,3,16,16], index: 1, kind: input, shape index: {}]   ;;  %s1540_s2 = inlined_call_operand.hbm [shape: f32[2,3,16,16], index: 2, kind: input, shape index: {}]   ;;  %s1541_s3 = inlined_call_operand.hbm [shape: f32[2,1,16], index: 3, kind: output, shape index: {}]  }
   0x1   :  { %1548 = sst [smem:[#allocation12_spill]] %s1538_s0 }
   0x2   :  { %8 = vsyncpa [#allocation3], 0 }
   0x3   :  { %10 = vsyncpa [#allocation3 + $0x1], 0 }
   0x4   :  { %11 = vsyncpa [#allocation6], 0 }
   0x5   :  { %13 = vsyncpa [#allocation6 + $0x1], 0 }
   0x6   :  { %14 = vsyncpa [#allocation4], 0 }
   0x7   :  { %16 = vsyncpa [#allocation4 + $0x1], 0  ;;  %s1018_s12 = smov 0   ;;  %s1020_s13 = smov 0  }
   0x8   :  { %s1022_s14 = smov 0   ;;  %s1024_s15 = smov 0  }
   0x9 LB: > { %s1039_s16 = sadd.s32 4294967295, %s987_s15   ;;  %s749_s17 = sadd.s32 4294967294, %s987_s15   ;;  %s987_s15 = sphi %s1024_s15, %s1567_s15   ;;  %s983_s14 = sphi %s1022_s14, %s1566_s14   ;;  %s979_s13 = sphi %s1020_s13, %s1565_s13   ;;  %s975_s12 = sphi %s1018_s12, %s1564_s12  }
   0xa   : > { %s1043_s18 = sadd.s32 1, %s987_s15   ;;  %s29_s19 = sadd.s32 1, %s983_s14 }
   0xb   : > { %s26_s20 = ssub.s32 %s987_s15, %s1043_s18  ;;  %p36_p0 = scmp.ne.s32.totalorder %s983_s14, %s979_s13 }
   0xc   : > { %p27_p1 = scmp.eq.s32.totalorder %s26_s20, 0  ;;  %p37_p2 = scmp.eq.s32.totalorder %s987_s15, 0 }
   0xd   : > { %p42_p3 = scmp.ne.s32.totalorder %s979_s13, %s975_s12  ;;  %p43_p4 = scmp.eq.s32.totalorder %s1039_s16, 0 }
   0xe   : > { %s1055_s21 = scalar_select %p27_p1, %s983_s14, %s29_s19  }
   0xf   : > { %p38_p5 = por %p37_p2, %p36_p0  ;;  %p1057_p6 = por %p43_p4, %p42_p3 }
  0x10   : > { %p118_p7 = scmp.eq.s32.totalorder %s1039_s16, 1  ;;  %p124_p8 = scmp.eq.s32.totalorder %s749_s17, 1 }
  0x11   : > { %s1549_s22 = scalar_select %p1057_p6, 1, 0 }
  0x12   : > { %p788_p10 = scmp.lt.s32.totalorder %s987_s15, 2  ;;  %p1064_p11 = por %p118_p7, %p36_p0 }
  0x13   : > { %p1068_p12 = por %p124_p8, %p42_p3  ;;  %s144_s25 = sand.u32 1, %s983_s14  }
  0x14   : > { %s1550_s23 = scalar_select %p1064_p11, 1, 0 }
  0x15   : > { %s1551_s24 = scalar_select %p1068_p12, 1, 0 }
  0x16   : > { %s1074_s26 = smul.u32 768, %s987_s15  ;;  %p1080_p13 = pnand %p788_p10, %p38_p5 }
  0x17   : > { %s1078_s27 = smul.u32 48, %s144_s25  ;;  %s165_s29 = sand.u32 1, %s987_s15  }
  0x18   : > { %s1089_s5 = scalar_lea.hbm %s1539_s1, %s1074_s26  ;;  %s1095_s8 = scalar_lea.sflag [#allocation6], %s165_s29 }
  0x19   : > { %s169_s6 = scalar_lea.vmem [#allocation5], %s1078_s27  ;;  %s827_s9 = scalar_lea.hbm %s1089_s5, 768 }
  0x1a   : > { %s176_s7 = sshll.u32 %s169_s6, 4  ;;  %p828_p1 = scmp.ne.s32.totalorder %s1089_s5, %s827_s9  ;;  %s1092_s7 = int_to_ptr.vmem [resolvable:$true] %s176_s7 }
  0x1b   : > { %p1101_p2 = pneg %p1080_p13  ;;  %s832_s19 = scalar_lea.hbm %s1539_s1, 1536 }
  0x1c   : > { %p833_p5 = scmp.lt.u32.totalorder %s1089_s5, %s1539_s1  ;;  %p834_p7 = scmp.lt.u32.totalorder %s832_s19, %s827_s9 }
  0x1d   : > { %p830_p3 = pnand %p1101_p2, %p828_p1  ;;  %p836_p10 = scmp.lt.u32.totalorder %s827_s9, %s1089_s5 }
  0x1e   : > { %p835_p8 = por %p834_p7, %p833_p5 }
  0x1f   : > { %p831_p4 = pneg %p830_p3 }
  0x20   : > { %p837_p9 = por %p836_p10, %p835_p8 }
  0x22   : > { %p838_p0 = pnand %p837_p9, %p831_p4 }
  0x24   : > { %841 = shalt.err (!%p838_p0)
}
  0x25   : > { %s842_s29 = scalar_lea.vmem %s1092_s7, 768  ;;  %s989_s4 = smov [#allocation5]  }
  0x26   : > { %p843_p1 = scmp.ne.s32.totalorder %s1092_s7, %s842_s29  ;;  %s847_s6 = sshll.u32 %s989_s4, 4  ;;  %s848_s6 = int_to_ptr.vmem [resolvable:$false] %s847_s6 }
  0x27   : > { %s849_s11 = scalar_lea.vmem %s848_s6, 1536  ;;  %p850_p11 = scmp.lt.s32.totalorder %s1092_s7, %s848_s6 }
  0x28   : > { %p845_p3 = pnand %p843_p1, %p1101_p2  ;;  %p851_p6 = scmp.lt.s32.totalorder %s849_s11, %s842_s29 }
  0x2a   : > { %p846_p12 = pneg %p845_p3  ;;  %p852_p5 = por %p851_p6, %p850_p11 }
  0x2c   : > { %p853_p7 = pnand %p852_p5, %p846_p12 }
  0x2e   : > { %856 = shalt.err (!%p853_p7)
}
  0x2f   : > { %s1544_s9 = smov 128   ;;  %s1546_s17 = smov 8  }
  0x30   : > { %780 = dma.hbm_to_vmem [thread:$0]  (!%p1080_p13), %s1089_s5, 768, %s1092_s7, %s1095_s8, %s1544_s9, %s1544_s9, %s1546_s17  }
  0x31   : > { %p205_p6 = scmp.lt.s32.totalorder %s987_s15, 3  ;;  %s1554_s0 = sld [smem:[#allocation12_spill]] }
  0x32   : > { %p1555_p9 = scmp.ge.s32.totalorder %s987_s15, 1  ;;  %s148_s4 = scalar_lea.vmem [#allocation2], %s1078_s27 }
  0x33   : > { %s155_s6 = sshll.u32 %s148_s4, 4  ;;  %s1146_s5 = scalar_lea.sflag [#allocation3], %s144_s25  ;;  %s1142_s6 = int_to_ptr.vmem [resolvable:$true] %s155_s6 }
  0x34   : > { %p1137_p11 = pnand %p1555_p9, %p205_p6 }
  0x36   : > { %s1556_s29 = scalar_select %p1137_p11, 1, 0 }
  0x37   : > { %s1133_s30 = scalar_lea.hbm %s1554_s0, %s1074_s26  ;;  %s862_s20 = scalar_lea.hbm %s1554_s0, 1536 }
  0x38   : > { %s857_s7 = scalar_lea.hbm %s1133_s30, 768  ;;  %p863_p8 = scmp.lt.u32.totalorder %s1133_s30, %s1554_s0 }
  0x39   : > { %p858_p12 = scmp.ne.s32.totalorder %s1133_s30, %s857_s7  ;;  %p864_p10 = scmp.lt.u32.totalorder %s862_s20, %s857_s7 }
  0x3a   : > { %p866_p3 = scmp.lt.u32.totalorder %s857_s7, %s1133_s30 }
  0x3b   : > { %p860_p0 = pnand %p858_p12, %p1101_p2  ;;  %p865_p1 = por %p864_p10, %p863_p8 }
  0x3d   : > { %p861_p4 = pneg %p860_p0  ;;  %p867_p5 = por %p866_p3, %p865_p1 }
  0x3f   : > { %p868_p7 = pnand %p867_p5, %p861_p4 }
  0x41   : > { %871 = shalt.err (!%p868_p7)
}
  0x42   : > { %s872_s25 = scalar_lea.vmem %s1142_s6, 768  ;;  %s992_s4 = smov [#allocation2]  }
  0x43   : > { %p873_p6 = scmp.ne.s32.totalorder %s1142_s6, %s872_s25  ;;  %s877_s11 = sshll.u32 %s992_s4, 4  ;;  %s878_s11 = int_to_ptr.vmem [resolvable:$false] %s877_s11 }
  0x44   : > { %s879_s9 = scalar_lea.vmem %s878_s11, 1536  ;;  %p880_p0 = scmp.lt.s32.totalorder %s1142_s6, %s878_s11 }
  0x45   : > { %p875_p9 = pnand %p873_p6, %p1101_p2  ;;  %p881_p11 = scmp.lt.s32.totalorder %s879_s9, %s872_s25 }
  0x47   : > { %p876_p12 = pneg %p875_p9  ;;  %p882_p8 = por %p881_p11, %p880_p0 }
  0x49   : > { %p883_p10 = pnand %p882_p8, %p876_p12 }
  0x4b   : > { %886 = shalt.err (!%p883_p10)
}
  0x4c   : > { %s1557_s17 = smov 8   ;;  %s1558_s7 = smov 128  }
  0x4d   : > { %777 = dma.hbm_to_vmem [thread:$0]  (!%p1080_p13), %s1133_s30, 768, %s1142_s6, %s1146_s5, %s1558_s7, %s1558_s7, %s1557_s17  }
  0x4e   : > { %s1177_s4 = scalar_lea.hbm %s1540_s2, %s1074_s26  ;;  %s190_s25 = scalar_lea.vmem [#allocation7], %s1078_s27 }
  0x4f   : > { %s197_s11 = sshll.u32 %s190_s25, 4  ;;  %s887_s9 = scalar_lea.hbm %s1177_s4, 768  ;;  %s1180_s11 = int_to_ptr.vmem [resolvable:$true] %s197_s11 }
  0x50   : > { %p888_p11 = scmp.ne.s32.totalorder %s1177_s4, %s887_s9  ;;  %s892_s6 = scalar_lea.hbm %s1540_s2, 1536 }
  0x51   : > { %p893_p3 = scmp.lt.u32.totalorder %s1177_s4, %s1540_s2  ;;  %p894_p5 = scmp.lt.u32.totalorder %s892_s6, %s887_s9 }
  0x52   : > { %p890_p4 = pnand %p888_p11, %p1101_p2  ;;  %p896_p6 = scmp.lt.u32.totalorder %s887_s9, %s1177_s4 }
  0x53   : > { %p895_p7 = por %p894_p5, %p893_p3 }
  0x54   : > { %p891_p1 = pneg %p890_p4 }
  0x55   : > { %p897_p9 = por %p896_p6, %p895_p7 }
  0x57   : > { %p898_p12 = pnand %p897_p9, %p891_p1 }
  0x59   : > { %901 = shalt.err (!%p898_p12)
}
  0x5a   : > { %s902_s27 = scalar_lea.vmem %s1180_s11, 768  ;;  %s993_s0 = smov [#allocation7]  }
  0x5b   : > { %p903_p0 = scmp.ne.s32.totalorder %s1180_s11, %s902_s27  ;;  %s907_s19 = sshll.u32 %s993_s0, 4  ;;  %s908_s19 = int_to_ptr.vmem [resolvable:$false] %s907_s19 }
  0x5c   : > { %s909_s20 = scalar_lea.vmem %s908_s19, 1536  ;;  %p910_p11 = scmp.lt.s32.totalorder %s1180_s11, %s908_s19 }
  0x5d   : > { %p905_p8 = pnand %p903_p0, %p1101_p2  ;;  %p911_p4 = scmp.lt.s32.totalorder %s909_s20, %s902_s27 }
  0x5f   : > { %p906_p10 = pneg %p905_p8  ;;  %p912_p3 = por %p911_p4, %p910_p11 }
  0x61   : > { %p913_p5 = pnand %p912_p3, %p906_p10 }
  0x63   : > { %916 = shalt.err (!%p913_p5)
}
  0x64   : > { %783 = dma.hbm_to_vmem [thread:$0]  (!%p1080_p13), %s1177_s4, 768, %s1180_s11, %s1095_s8, %s1558_s7, %s1558_s7, %s1557_s17  }
  0x65   : > { %p1559_p2 = scmp.ne.s32.totalorder %s1556_s29, 0 }
  0x66   : > { %s1210_s10 = sand.u32 (!%p1559_p2), 1, %s979_s13   ;;  %p1560_p1 = scmp.ne.s32.totalorder (!%p1559_p2), %s1549_s22, 0 }
  0x67   : > { %209 = sbr.rel (%p1559_p2) target bundleno = 565 (0x235), region = 32  ;;  %s212_s28 = scalar_lea.sflag (!%p1559_p2), [#allocation3], %s1210_s10 }
  0x68   : > { %s1213_s25 = smul.u32 (!%p1559_p2), 48, %s1210_s10 }
  0x6a   : > { %s215_s9 = scalar_lea.vmem (!%p1559_p2), [#allocation2], %s1213_s25 }
  0x6e   : > { %962 = dma.done.wait (%p1560_p1), %s212_s28, 768  }
  0x6f   : > { %964 = vsyncadd (%p1560_p1), %s212_s28, 4294966528  ;;  %s220_s8 = sand.u32 1, %s1039_s16   ;;  %s224_s17 = scalar_lea.vmem [#allocation5], %s1213_s25 }
  0x70   : > { %s221_s29 = scalar_lea.sflag [#allocation6], %s220_s8 }
  0x71   : > { %966 = dma.done.wait (%p1560_p1), %s221_s29, 1536  }
  0x72   : > { %968 = vsyncadd (%p1560_p1), %s221_s29, 4294965760  ;;  %v265_v0 = vlaneseq  ;;  %v276_v2 = vld [vmem:[%s215_s9] sm:$0xff]  ;;  %v277_v3 = vld [vmem:[%s215_s9 + $0x8] sm:$0xff]  ;;  %s233_s22 = scalar_lea.vmem [#allocation7], %s1213_s25  ;;  %s994_s7 = smov 16   ;;  %vm314_vm4 = vcmask 1047680  }
  0x73   : > { %v278_v4 = vld [vmem:[%s215_s9 + $0x10] sm:$0xff]  ;;  %v279_v5 = vld [vmem:[%s215_s9 + $0x18] sm:$0xff]  ;;  %v280_v6 = vld [vmem:[%s215_s9 + $0x20] sm:$0xff]  ;;  %v282_v8 = vmul.f32 0.299, %v276_v2  ;;  %s995_s4 = smov 113  }
  0x74   : > { %v1228_v1 = vshrl.u32 %v265_v0, 7  ;;  %v281_v7 = vld [vmem:[%s215_s9 + $0x28] sm:$0xff]  ;;  %v283_v10 = vmul.f32 0.299, %v277_v3  ;;  %v284_v11 = vmul.f32 0.587, %v278_v4 }
  0x75   : > { %v285_v12 = vmul.f32 0.587, %v279_v5  ;;  %v288_v13 = vmul.f32 0.114, %v280_v6  ;;  %v289_v14 = vmul.f32 0.114, %v281_v7 }
  0x76   : > { %v1231_v9 = vadd.s32 8, %v1228_v1  ;;  %v389_v15 = vld [vmem:[%s224_s17] sm:$0xff]  ;;  %v390_v16 = vld [vmem:[%s224_s17 + $0x8] sm:$0xff]  ;;  %vm270_vm0 = vcmp.eq.s32.totalorder %v1228_v1, 0  ;;  %v286_v17 = vadd.f32 %v284_v11, %v282_v8  ;;  %v391_v19 = vld [vmem:[%s224_s17 + $0x10] sm:$0xff]  ;;  %vm294_vm1 = vcmp.lt.s32.totalorder %v1228_v1, 1 }
  0x77   : > { %v287_v18 = vadd.f32 %v285_v12, %v283_v10  ;;  %v392_v20 = vld [vmem:[%s224_s17 + $0x18] sm:$0xff]  ;;  %v393_v21 = vld [vmem:[%s224_s17 + $0x20] sm:$0xff]  ;;  %v395_v22 = vmul.f32 0.299, %v389_v15  ;;  %v394_v23 = vld [vmem:[%s224_s17 + $0x28] sm:$0xff]  ;;  %vm301_vm2 = vcmp.lt.s32.totalorder %v1228_v1, 7 }
  0x78   : > { %v396_v24 = vmul.f32 0.299, %v390_v16  ;;  %v397_v25 = vmul.f32 0.587, %v391_v19  ;;  %v290_v26 = vadd.f32 %v288_v13, %v286_v17  ;;  %v398_v28 = vmul.f32 0.587, %v392_v20 }
  0x79   : > { %v291_v27 = vadd.f32 %v289_v14, %v287_v18  ;;  %v401_v29 = vmul.f32 0.114, %v393_v21  ;;  %v499_v30 = vld [vmem:[%s233_s22] sm:$0xff]  ;;  %v500_v31 = vld [vmem:[%s233_s22 + $0x8] sm:$0xff]  ;;  %v402_v33 = vmul.f32 0.114, %v394_v23 }
  0x7a   : > { %v399_v32 = vadd.f32 %v397_v25, %v395_v22  ;;  %vm273_vm3 = vcmp.eq.s32.totalorder %v1231_v9, 15  ;;  %v292_v34 = vrot.slane %v290_v26, 7  ;;  %v299_v36 = vrot.slane %v290_v26, 1  ;;  %v501_v40 = vld [vmem:[%s233_s22 + $0x10] sm:$0xff]  ;;  %v502_v41 = vld [vmem:[%s233_s22 + $0x18] sm:$0xff]  ;;  %v503_v48 = vld [vmem:[%s233_s22 + $0x20] sm:$0xff] }
  0x7b   : > { %v293_v35 = vrot.slane %v291_v27, 7  ;;  %v300_v37 = vrot.slane %v291_v27, 1  ;;  %v400_v38 = vadd.f32 %v398_v28, %v396_v24  ;;  %v505_v42 = vmul.f32 0.299, %v499_v30  ;;  %v504_v53 = vld [vmem:[%s233_s22 + $0x28] sm:$0xff]  ;;  %s996_s11 = smov 127  }
  0x7c   : > { %v403_v39 = vadd.f32 %v401_v29, %v399_v32  ;;  %v506_v43 = vmul.f32 0.299, %v500_v31  ;;  %v507_v56 = vmul.f32 0.587, %v501_v40  ;;  %v508_v57 = vmul.f32 0.587, %v502_v41 }
  0x7d   : > { %v296_v44 = vsel %vm294_vm1, %v293_v35, %v292_v34  ;;  %v302_v45 = vsel %vm301_vm2, %v299_v36, %v300_v37  ;;  %v295_v46 = vsel %vm294_vm1, %v292_v34, %v293_v35  ;;  %v303_v47 = vsel %vm301_vm2, %v300_v37, %v299_v36  ;;  %s756_s30 = sshll.u32 %s1039_s16, 4  ;;  %s264_s6 = scalar_lea.vmem [#allocation8], %s1210_s10 }
  0x7e   : > { %v297_v49 = vsel %vm270_vm0, %v290_v26, %v296_v44  ;;  %v404_v50 = vadd.f32 %v402_v33, %v400_v38  ;;  %v405_v51 = vrot.slane %v403_v39, 7  ;;  %v411_v52 = vrot.slane %v403_v39, 1  ;;  %s640_s5 = sshll.u32 %s264_s6, 4  ;;  %s1494_s0 = scalar_lea.hbm %s1541_s3, %s756_s30  ;;  %s1496_s5 = int_to_ptr.vmem [resolvable:$true] %s640_s5 }
  0x7f   : > { %v1248_v54 = vsub.f32 %v302_v45, %v297_v49  ;;  %v305_v55 = vsel %vm273_vm3, %v291_v27, %v303_v47  ;;  %v511_v61 = vmul.f32 0.114, %v503_v48  ;;  %v509_v62 = vadd.f32 %v507_v56, %v505_v42  ;;  %s628_s19 = scalar_lea.sflag [#allocation4], %s1210_s10  ;;  %s917_s20 = scalar_lea.vmem %s1496_s5, 16 }
  0x80   : > { %v406_v58 = vrot.slane %v404_v50, 7  ;;  %v412_v59 = vrot.slane %v404_v50, 1  ;;  %v1252_v60 = vsub.f32 %v305_v55, %v295_v46  ;;  %v510_v63 = vadd.f32 %v508_v57, %v506_v43  ;;  %p918_p13 = scmp.ne.s32.totalorder %s1496_s5, %s917_s20  ;;  %p1561_p7 = scmp.ne.s32.totalorder %s1550_s23, 0 }
  0x81   : > { %347 = vrot.lane.b32.xlu0 %v1248_v54, %s994_s7  ;;  %v512_v2 = vmul.f32 0.114, %v504_v53  ;;  %v306_v3 = vmul.f32 2.0, %v290_v26  ;;  %v513_v11 = vadd.f32 %v511_v61, %v509_v62  ;;  %v307_v20 = vmul.f32 2.0, %v291_v27  ;;  %s997_s16 = smov [#allocation8]  }
  0x82   : > { %v408_v4 = vsel %vm294_vm1, %v406_v58, %v405_v51  ;;  %v413_v5 = vsel %vm301_vm2, %v411_v52, %v412_v59  ;;  %v407_v6 = vsel %vm294_vm1, %v405_v51, %v406_v58  ;;  %v414_v7 = vsel %vm301_vm2, %v412_v59, %v411_v52  ;;  %p919_p6 = pnand %p918_p13, %p1561_p7  ;;  %s921_s25 = sshll.u32 %s997_s16, 4  ;;  %s922_s25 = int_to_ptr.vmem [resolvable:$false] %s921_s25 }
  0x83   : > { %v409_v8 = vsel %vm270_vm0, %v403_v39, %v408_v4  ;;  %v416_v10 = vsel %vm273_vm3, %v404_v50, %v414_v7  ;;  %v514_v12 = vadd.f32 %v512_v2, %v510_v63  ;;  %v515_v14 = vrot.slane %v513_v11, 7  ;;  %s923_s28 = scalar_lea.vmem %s922_s25, 32  ;;  %p924_p12 = scmp.lt.s32.totalorder %s1496_s5, %s922_s25 }
  0x84   : > { %v1268_v13 = vsub.f32 %v413_v5, %v409_v8  ;;  %v521_v16 = vrot.slane %v513_v11, 1  ;;  %v1274_v18 = vsub.f32 %v416_v10, %v407_v6  ;;  %v308_v19 = vadd.f32 %v306_v3, %v297_v49  ;;  %p920_p9 = pneg %p919_p6  ;;  %p925_p0 = scmp.lt.s32.totalorder %s923_s28, %s917_s20 }
  0x85   : > { %350 = vrot.lane.b32.xlu0 %v1252_v60, %s994_s7  ;;  %v516_v15 = vrot.slane %v514_v12, 7  ;;  %v522_v17 = vrot.slane %v514_v12, 1  ;;  %v417_v21 = vmul.f32 2.0, %v403_v39  ;;  %v309_v30 = vadd.f32 %v307_v20, %v295_v46 }
  0x86   : > { %457 = vrot.lane.b32.xlu1 %v1268_v13, %s994_s7  ;;  %v418_v31 = vmul.f32 2.0, %v404_v50  ;;  %v1296_v32 = vadd.f32 %v308_v19, %v302_v45  ;;  %v527_v1 = vmul.f32 2.0, %v513_v11  ;;  %v528_v35 = vmul.f32 2.0, %v514_v12  ;;  %p926_p8 = por %p925_p0, %p924_p12 }
  0x87   : > { %v518_v22 = vsel %vm294_vm1, %v516_v15, %v515_v14  ;;  %v523_v23 = vsel %vm301_vm2, %v521_v16, %v522_v17  ;;  %v517_v24 = vsel %vm294_vm1, %v515_v14, %v516_v15  ;;  %v524_v25 = vsel %vm301_vm2, %v522_v17, %v521_v16 }
  0x88   : > { %v519_v26 = vsel %vm270_vm0, %v513_v11, %v518_v22  ;;  %v526_v28 = vsel %vm273_vm3, %v514_v12, %v524_v25  ;;  %v419_v33 = vadd.f32 %v417_v21, %v409_v8  ;;  %v1300_v9 = vadd.f32 %v309_v30, %v305_v55  ;;  %p927_p10 = pnand %p926_p8, %p920_p9 }
  0x89   : > { %v1288_v27 = vsub.f32 %v523_v23, %v519_v26  ;;  %v1292_v29 = vsub.f32 %v526_v28, %v517_v24  ;;  %v420_v34 = vadd.f32 %v418_v31, %v407_v6  ;;  %v529_v37 = vadd.f32 %v527_v1, %v519_v26 }
  0x8a   : > { %460 = vrot.lane.b32.xlu1 %v1274_v18, %s994_s7  ;;  %v1304_v36 = vadd.f32 %v419_v33, %v413_v5  ;;  %v530_v39 = vadd.f32 %v528_v35, %v517_v24  ;;  %vm615_vm7 = vcmask 130048   ;;  %vm625_vm8 = vcmask 122880  }
  0x8b   : > { %567 = vrot.lane.b32.xlu0 %v1288_v27, %s994_s7  ;;  %v1308_v38 = vadd.f32 %v420_v34, %v416_v10  ;;  %v1312_v40 = vadd.f32 %v529_v37, %v523_v23 }
  0x8c   : > { %v1316_v41 = vadd.f32 %v530_v39, %v526_v28 }
  0x8e   : > { %570 = vrot.lane.b32.xlu1 %v1292_v29, %s994_s7 }
  0x8f   : > { %315 = vrot.lane.b32.xlu0 %v1296_v32, %s994_s7 }
  0x92   : > { %318 = vrot.lane.b32.xlu1 %v1300_v9, %s994_s7 }
  0x93   : > { %425 = vrot.lane.b32.xlu0 %v1304_v36, %s994_s7 }
  0x96   : > { %428 = vrot.lane.b32.xlu1 %v1308_v38, %s994_s7 }
  0x97   : > { %535 = vrot.lane.b32.xlu0 %v1312_v40, %s994_s7 }
  0x9a   : > { %538 = vrot.lane.b32.xlu1 %v1316_v41, %s994_s7 }
  0xf3   : > { %v348_v42 = vpop.permute.xlu0 %347 }
  0xf4   : > { %v349_v43 = vsel %vm314_vm4, %v348_v42, %v1248_v54 }
  0xf5   : > { %353 = vrot.lane.b32.xlu0 %v349_v43, %s994_s7 }
  0xf7   : > { %v351_v44 = vpop.permute.xlu0 %350 }
  0xf8   : > { %v458_v45 = vpop.permute.xlu1 %457  ;;  %v352_v46 = vsel %vm314_vm4, %v351_v44, %v1252_v60 }
  0xf9   : > { %v459_v47 = vsel %vm314_vm4, %v458_v45, %v1268_v13  ;;  %355 = vrot.lane.b32.xlu1 %v352_v46, %s994_s7 }
  0xfa   : > { %463 = vrot.lane.b32.xlu0 %v459_v47, %s994_s7 }
  0xfc   : > { %v461_v48 = vpop.permute.xlu1 %460 }
  0xfd   : > { %v462_v49 = vsel %vm314_vm4, %v461_v48, %v1274_v18  ;;  %v568_v50 = vpop.permute.xlu0 %567 }
  0xfe   : > { %465 = vrot.lane.b32.xlu1 %v462_v49, %s994_s7  ;;  %v569_v51 = vsel %vm314_vm4, %v568_v50, %v1288_v27 }
  0xff   : > { %573 = vrot.lane.b32.xlu0 %v569_v51, %s994_s7 }
 0x100   : > { %v571_v52 = vpop.permute.xlu1 %570 }
 0x101   : > { %v316_v53 = vpop.permute.xlu0 %315  ;;  %v572_v55 = vsel %vm314_vm4, %v571_v52, %v1292_v29  ;;  %v1407_v52 = vand.u32 127, %v265_v0 }
 0x102   : > { %v317_v56 = vsel %vm314_vm4, %v316_v53, %v1296_v32  ;;  %575 = vrot.lane.b32.xlu1 %v572_v55, %s994_s7 }
 0x103   : > { %321 = vrot.lane.b32.xlu0 %v317_v56, %s994_s7  ;;  %vm274_vm5 = vcmp.eq.s32.totalorder %v1407_v52, 0  ;;  %vm275_vm6 = vcmp.eq.s32.totalorder %v1407_v52, 15 }
 0x104   : > { %v319_v57 = vpop.permute.xlu1 %318 }
 0x105   : > { %v320_v58 = vsel %vm314_vm4, %v319_v57, %v1300_v9  ;;  %v426_v59 = vpop.permute.xlu0 %425 }
 0x106   : > { %323 = vrot.lane.b32.xlu1 %v320_v58, %s994_s7  ;;  %v427_v61 = vsel %vm314_vm4, %v426_v59, %v1304_v36  ;;  %v479_v58 = vmul.f32 2.0, %v1268_v13  ;;  %v369_v59 = vmul.f32 2.0, %v1248_v54 }
 0x107   : > { %431 = vrot.lane.b32.xlu0 %v427_v61, %s994_s7 }
 0x108   : > { %v429_v62 = vpop.permute.xlu1 %428 }
 0x109   : > { %v430_v63 = vsel %vm314_vm4, %v429_v62, %v1308_v38  ;;  %v536_v2 = vpop.permute.xlu0 %535 }
 0x10a   : > { %433 = vrot.lane.b32.xlu1 %v430_v63, %s994_s7  ;;  %v537_v3 = vsel %vm314_vm4, %v536_v2, %v1312_v40  ;;  %v480_v2 = vmul.f32 2.0, %v1274_v18 }
 0x10b   : > { %541 = vrot.lane.b32.xlu0 %v537_v3, %s994_s7 }
 0x10c   : > { %v539_v4 = vpop.permute.xlu1 %538 }
 0x10d   : > { %v540_v5 = vsel %vm314_vm4, %v539_v4, %v1316_v41 }
 0x10e   : > { %543 = vrot.lane.b32.xlu1 %v540_v5, %s994_s7 }
 0x167   : > { %v354_v6 = vpop.permute.xlu0 %353 }
 0x168   : > { %v357_v7 = vsel %vm314_vm4, %v354_v6, %v1248_v54 }
 0x169   : > { %361 = vrot.lane.b32.xlu0 %v357_v7, %s995_s4 }
 0x16b   : > { %v356_v8 = vpop.permute.xlu1 %355 }
 0x16c   : > { %v464_v10 = vpop.permute.xlu0 %463  ;;  %v358_v11 = vsel %vm314_vm4, %v356_v8, %v1252_v60 }
 0x16d   : > { %v467_v12 = vsel %vm314_vm4, %v464_v10, %v1268_v13  ;;  %363 = vrot.lane.b32.xlu1 %v358_v11, %s995_s4  ;;  %v370_v10 = vmul.f32 2.0, %v1252_v60 }
 0x16e   : > { %471 = vrot.lane.b32.xlu0 %v467_v12, %s995_s4 }
 0x170   : > { %v466_v14 = vpop.permute.xlu1 %465 }
 0x171   : > { %v468_v15 = vsel %vm314_vm4, %v466_v14, %v1274_v18  ;;  %v574_v16 = vpop.permute.xlu0 %573  ;;  %v590_v14 = vmul.f32 2.0, %v1292_v29 }
 0x172   : > { %373 = vrot.lane.b32.xlu0 %v357_v7, %s996_s11  ;;  %473 = vrot.lane.b32.xlu1 %v468_v15, %s995_s4  ;;  %v577_v19 = vsel %vm314_vm4, %v574_v16, %v1288_v27 }
 0x174   : > { %v576_v17 = vpop.permute.xlu1 %575 }
 0x175   : > { %v322_v20 = vpop.permute.xlu0 %321  ;;  %v578_v22 = vsel %vm314_vm4, %v576_v17, %v1292_v29 }
 0x176   : > { %483 = vrot.lane.b32.xlu0 %v467_v12, %s996_s11  ;;  %375 = vrot.lane.b32.xlu1 %v358_v11, %s996_s11  ;;  %v325_v21 = vsel %vm314_vm4, %v322_v20, %v1296_v32  ;;  %v589_v12 = vmul.f32 2.0, %v1288_v27 }
 0x178   : > { %v324_v23 = vpop.permute.xlu1 %323 }
 0x179   : > { %v326_v24 = vsel %vm314_vm4, %v324_v23, %v1300_v9  ;;  %v432_v25 = vpop.permute.xlu0 %431 }
 0x17a   : > { %581 = vrot.lane.b32.xlu0 %v577_v19, %s995_s4  ;;  %485 = vrot.lane.b32.xlu1 %v468_v15, %s996_s11  ;;  %v435_v26 = vsel %vm314_vm4, %v432_v25, %v1304_v36 }
 0x17c   : > { %v434_v28 = vpop.permute.xlu1 %433 }
 0x17d   : > { %v436_v30 = vsel %vm314_vm4, %v434_v28, %v1308_v38  ;;  %v542_v31 = vpop.permute.xlu0 %541 }
 0x17e   : > { %329 = vrot.lane.b32.xlu0 %v325_v21, %s996_s11  ;;  %583 = vrot.lane.b32.xlu1 %v578_v22, %s995_s4  ;;  %v545_v33 = vsel %vm314_vm4, %v542_v31, %v1312_v40 }
 0x180   : > { %v544_v1 = vpop.permute.xlu1 %543 }
 0x181   : > { %v546_v34 = vsel %vm314_vm4, %v544_v1, %v1316_v41 }
 0x182   : > { %337 = vrot.lane.b32.xlu0 %v325_v21, %s995_s4  ;;  %331 = vrot.lane.b32.xlu1 %v326_v24, %s996_s11 }
 0x186   : > { %439 = vrot.lane.b32.xlu0 %v435_v26, %s996_s11  ;;  %339 = vrot.lane.b32.xlu1 %v326_v24, %s995_s4 }
 0x18a   : > { %447 = vrot.lane.b32.xlu0 %v435_v26, %s995_s4  ;;  %441 = vrot.lane.b32.xlu1 %v436_v30, %s996_s11 }
 0x18e   : > { %549 = vrot.lane.b32.xlu0 %v545_v33, %s996_s11  ;;  %449 = vrot.lane.b32.xlu1 %v436_v30, %s995_s4 }
 0x192   : > { %557 = vrot.lane.b32.xlu0 %v545_v33, %s995_s4  ;;  %551 = vrot.lane.b32.xlu1 %v546_v34, %s996_s11 }
 0x196   : > { %593 = vrot.lane.b32.xlu0 %v577_v19, %s996_s11  ;;  %559 = vrot.lane.b32.xlu1 %v546_v34, %s995_s4 }
 0x19a   : > { %595 = vrot.lane.b32.xlu1 %v578_v22, %s996_s11 }
 0x1db   : > { %v362_v35 = vpop.permute.xlu0 %361 }
 0x1dc   : > { %v367_v0 = vsel %vm274_vm5, %v1248_v54, %v362_v35 }
 0x1dd   : > { %v371_v11 = vadd.f32 %v369_v59, %v367_v0 }
 0x1df   : > { %v364_v37 = vpop.permute.xlu1 %363 }
 0x1e0   : > { %v472_v39 = vpop.permute.xlu0 %471 }
 0x1e1   : > { %v477_v61 = vsel %vm274_vm5, %v1268_v13, %v472_v39 }
 0x1e2   : > { %v481_v8 = vadd.f32 %v479_v58, %v477_v61 }
 0x1e4   : > { %v374_v42 = vpop.permute.xlu0 %373  ;;  %v474_v43 = vpop.permute.xlu1 %473 }
 0x1e8   : > { %v484_v44 = vpop.permute.xlu0 %483  ;;  %v376_v45 = vpop.permute.xlu1 %375 }
 0x1e9   : > { %v489_v3 = vsel %vm275_vm6, %v1268_v13, %v484_v44  ;;  %v478_v13 = vsel %vm274_vm5, %v1274_v18, %v474_v43 }
 0x1ea   : > { %v491_v16 = vadd.f32 %v489_v3, %v481_v8  ;;  %v482_v20 = vadd.f32 %v480_v2, %v478_v13 }
 0x1ec   : > { %v582_v46 = vpop.permute.xlu0 %581  ;;  %v486_v47 = vpop.permute.xlu1 %485  ;;  %v495_v34 = vand.u32 2147483647, %v491_v16 }
 0x1ed   : > { %v587_v21 = vsel %vm274_vm5, %v1288_v27, %v582_v46  ;;  %v490_v22 = vsel %vm275_vm6, %v1274_v18, %v486_v47  ;;  %v380_v18 = vsel %vm275_vm6, %v1252_v60, %v376_v45 }
 0x1ee   : > { %v492_v35 = vadd.f32 %v490_v22, %v482_v20  ;;  %v591_v39 = vadd.f32 %v589_v12, %v587_v21 }
 0x1f0   : > { %v330_v48 = vpop.permute.xlu0 %329  ;;  %v584_v49 = vpop.permute.xlu1 %583 }
 0x1f1   : > { %v335_v4 = vsel %vm275_vm6, %v1296_v32, %v330_v48 }
 0x1f4   : > { %v338_v50 = vpop.permute.xlu0 %337  ;;  %v332_v51 = vpop.permute.xlu1 %331 }
 0x1f5   : > { %v343_v5 = vsel %vm274_vm5, %v1296_v32, %v338_v50  ;;  %v368_v32 = vsel %vm274_vm5, %v1252_v60, %v364_v37 }
 0x1f6   : > { %v345_v17 = vsub.f32 %v335_v4, %v343_v5  ;;  %v372_v31 = vadd.f32 %v370_v10, %v368_v32 }
 0x1f8   : > { %v440_v53 = vpop.permute.xlu0 %439  ;;  %v340_v55 = vpop.permute.xlu1 %339  ;;  %v383_v37 = vand.u32 2147483647, %v345_v17  ;;  %v382_v60 = vadd.f32 %v380_v18, %v372_v31 }
 0x1f9   : > { %v445_v62 = vsel %vm275_vm6, %v1304_v36, %v440_v53  ;;  %v344_v25 = vsel %vm274_vm5, %v1300_v9, %v340_v55  ;;  %v496_v53 = vand.u32 2147483647, %v492_v35 }
 0x1fc   : > { %v448_v56 = vpop.permute.xlu0 %447  ;;  %v442_v57 = vpop.permute.xlu1 %441 }
 0x1fd   : > { %v453_v63 = vsel %vm274_vm5, %v1304_v36, %v448_v56  ;;  %v379_v36 = vsel %vm275_vm6, %v1248_v54, %v374_v42  ;;  %v446_v26 = vsel %vm275_vm6, %v1308_v38, %v442_v57  ;;  %v588_v42 = vsel %vm274_vm5, %v1292_v29, %v584_v49 }
 0x1fe   : > { %v455_v15 = vsub.f32 %v445_v62, %v453_v63  ;;  %v381_v19 = vadd.f32 %v379_v36, %v371_v11  ;;  %v592_v55 = vadd.f32 %v590_v14, %v588_v42 }
 0x200   : > { %v550_v6 = vpop.permute.xlu0 %549  ;;  %v450_v7 = vpop.permute.xlu1 %449  ;;  %v493_v33 = vand.u32 2147483647, %v455_v15  ;;  %v385_v47 = vand.u32 2147483647, %v381_v19 }
 0x201   : > { %v454_v54 = vsel %vm274_vm5, %v1308_v38, %v450_v7  ;;  %v555_v28 = vsel %vm275_vm6, %v1312_v40, %v550_v6  ;;  %v336_v38 = vsel %vm275_vm6, %v1300_v9, %v332_v51 }
 0x202   : > { %v456_v1 = vsub.f32 %v446_v26, %v454_v54  ;;  %v497_v9 = vadd.f32 %v495_v34, %v493_v33  ;;  %v387_v49 = vadd.f32 %v385_v47, %v383_v37 }
 0x204   : > { %v558_v23 = vpop.permute.xlu0 %557  ;;  %v552_v24 = vpop.permute.xlu1 %551  ;;  %v494_v50 = vand.u32 2147483647, %v456_v1  ;;  %v609_v63 = vmax.f32 %v387_v49, %v497_v9 }
 0x205   : > { %v563_v30 = vsel %vm274_vm5, %v1312_v40, %v558_v23  ;;  %v346_v40 = vsub.f32 %v336_v38, %v344_v25  ;;  %v556_v56 = vsel %vm275_vm6, %v1316_v41, %v552_v24 }
 0x206   : > { %v565_v43 = vsub.f32 %v555_v28, %v563_v30  ;;  %v498_v2 = vadd.f32 %v496_v53, %v494_v50 }
 0x207   : > { %v384_v57 = vand.u32 2147483647, %v346_v40 }
 0x208   : > { %v594_v44 = vpop.permute.xlu0 %593  ;;  %v560_v46 = vpop.permute.xlu1 %559  ;;  %v603_v58 = vand.u32 2147483647, %v565_v43 }
 0x209   : > { %v599_v45 = vsel %vm275_vm6, %v1288_v27, %v594_v44  ;;  %v564_v48 = vsel %vm274_vm5, %v1316_v41, %v560_v46  ;;  %v386_v27 = vand.u32 2147483647, %v382_v60 }
 0x20a   : > { %v601_v51 = vadd.f32 %v599_v45, %v591_v39  ;;  %v566_v61 = vsub.f32 %v556_v56, %v564_v48 }
 0x20b   : > { %v388_v5 = vadd.f32 %v386_v27, %v384_v57 }
 0x20c   : > { %v605_v59 = vand.u32 2147483647, %v601_v51  ;;  %v596_v0 = vpop.permute.xlu1 %595  ;;  %v604_v7 = vand.u32 2147483647, %v566_v61 }
 0x20d   : > { %v600_v62 = vsel %vm275_vm6, %v1292_v29, %v596_v0  ;;  %v610_v8 = vmax.f32 %v388_v5, %v498_v2 }
 0x20e   : > { %v607_v3 = vadd.f32 %v605_v59, %v603_v58  ;;  %v602_v4 = vadd.f32 %v600_v62, %v592_v55 }
 0x210   : > { %v611_v6 = vsub.f32 %v609_v63, %v607_v3  ;;  %v606_v41 = vand.u32 2147483647, %v602_v4 }
 0x212   : > { %v608_v10 = vadd.f32 %v606_v41, %v604_v7  ;;  %v613_v36 = vand.u32 2147483647, %v611_v6 }
 0x214   : > { %v612_v13 = vsub.f32 %v610_v8, %v608_v10  ;;  %v616_v12 = vsel %vm615_vm7, %v613_v36, 0.0 }
 0x216   : > { %v614_v11 = vand.u32 2147483647, %v612_v13 }
 0x218   : > { %v617_v52 = vsel %vm615_vm7, %v614_v11, 0.0 }
 0x219   : > { %v618_v29 = vadd.f32 %v617_v52, %v616_v12 }
 0x21b   : > { %v619_v14 = vrot.slane %v618_v29, 4 }
 0x21d   : > { %v620_v15 = vadd.f32 %v619_v14, %v618_v29 }
 0x21f   : > { %v621_v32 = vrot.slane %v620_v15, 2 }
 0x221   : > { %v622_v16 = vadd.f32 %v621_v32, %v620_v15 }
 0x223   : > { %v623_v17 = vrot.slane %v622_v16, 1 }
 0x225   : > { %v624_v54 = vadd.f32 %v623_v17, %v622_v16 }
 0x227   : > { %626 = vst.msk [vmem:[%s264_s6] sm:$0x1] %vm625_vm8, %v624_v54 }
 0x228   : > { %930 = shalt.err (!%p927_p10)
}
 0x229   : > { %s931_s10 = scalar_lea.hbm %s1494_s0, 16  ;;  %s935_s29 = scalar_lea.hbm %s1541_s3, 32 }
 0x22a   : > { %p932_p11 = scmp.ne.s32.totalorder %s1494_s0, %s931_s10  ;;  %p936_p5 = scmp.lt.u32.totalorder %s1494_s0, %s1541_s3 }
 0x22b   : > { %p937_p2 = scmp.lt.u32.totalorder %s935_s29, %s931_s10  ;;  %p939_p13 = scmp.lt.u32.totalorder %s931_s10, %s1494_s0 }
 0x22c   : > { %p933_p4 = pnand %p932_p11, %p1561_p7 }
 0x22d   : > { %p938_p1 = por %p937_p2, %p936_p5 }
 0x22e   : > { %p934_p3 = pneg %p933_p4 }
 0x22f   : > { %p940_p6 = por %p939_p13, %p938_p1 }
 0x231   : > { %p941_p9 = pnand %p940_p6, %p934_p3 }
 0x233   : > { %944 = shalt.err (!%p941_p9)
}
 0x234   : > { %772 = dma.vmem_to_hbm [thread:$0]  (%p1561_p7), %s1496_s5, 16, %s1494_s0, %s628_s19  }
 0x235 PF: > { %s652_s7 = sand.u32 1, %s975_s12   ;;  %p1562_p12 = scmp.ne.s32.totalorder %s1551_s24, 0 }
 0x236   : > { %p1563_p0 = scmp.ge.s32.totalorder %s987_s15, 2  ;;  %s653_s4 = scalar_lea.sflag [#allocation4], %s652_s7 }
 0x238   : > { %p785_p8 = pnand %p1563_p0, %p1562_p12 }
 0x23a   : > { %970 = dma.done.wait (!%p785_p8), %s653_s4, 16  }
 0x23b   : > { %972 = vsyncadd (!%p785_p8), %s653_s4, 4294967280  ;;  %p19_p10 = scmp.ge.s32.totalorder %s1043_s18, 4   ;;  %s1564_s12 = smov %s979_s13 }
 0x23c   : > { %s1565_s13 = smov %s983_s14  ;;  %s1566_s14 = smov %s1055_s21 }
 0x23d   : > { %s1567_s15 = smov %s1043_s18  ;;  %21 = sbr.rel (!%p19_p10) target bundleno = 9 (0x9), region = 101 }
 0x244   :  { %657 = vsyncpa [#allocation3], 1 }
 0x245   :  { %659 = vsyncpa [#allocation3 + $0x1], 1 }
 0x246   :  { %660 = vsyncpa [#allocation6], 1 }
 0x247   :  { %662 = vsyncpa [#allocation6 + $0x1], 1 }
 0x248   :  { %663 = vsyncpa [#allocation4], 1 }
 0x249   :  { %665 = vsyncpa [#allocation4 + $0x1], 1 }

</bundles_post_ra>
